<compile_context>
chip_gen: v7x
topology: tpu7x:2x2x1
jax: 0.10.0
libtpu: 0.0.40
codegen_flags: <defaults>
</compile_context>

<pallas_src>
import functools

import jax
import jax.numpy as jnp
from jax import lax
from jax.experimental import pallas as pl
from jax.experimental.pallas import tpu as pltpu

EPS_PPO = 1e-5
_LANES = 128
_DEFAULT_TILE_ROWS = 512   # ~85% of HBM roofline per measured tiled-add data


# ----------------------------------------------------------------------------
# Fused two-phase kernel: reduce (phase 0) -> normalize + surrogate (phase 1)
# ----------------------------------------------------------------------------
def _fused_ppo_kernel(
    ret_ref,        # (tile_rows, 128) returns[:-1] tile     (read both phases)
    vpred_ref,      # (tile_rows, 128) value_preds[:-1] tile  (read both phases)
    values_ref,     # (tile_rows, 128) critic output tile     (phase 0 only)
    logp_ref,       # (tile_rows, 128) new log-probs tile     (phase 1 only)
    old_logp_ref,   # (tile_rows, 128) old log-probs tile     (phase 1 only)
    ent_ref,        # (tile_rows, 128) per-sample entropy     (phase 0 only)
    adv_ref,        # out: (tile_rows, 128) normalized advantages (phase 1)
    losses_ref,     # out: (1, 128) [value_loss, action_loss, entropy, total]
    acc_sum,        # scratch (1,128) lane-partial sum(adv)
    acc_sq,         # scratch (1,128) lane-partial sum(adv^2)
    acc_vl,         # scratch (1,128) lane-partial value-loss sum
    acc_ent,        # scratch (1,128) lane-partial entropy sum
    acc_al,         # scratch (1,128) lane-partial min(surr1,surr2) sum
    *,
    m,              # number of valid elements (T*N), static
    tile_rows,
    clip_param,
    value_loss_coef,
    entropy_coef,
    use_clipped_value_loss,
    use_normalized_advantage,
    has_padding,
):
    phase = pl.program_id(0)
    tile = pl.program_id(1)
    num_tiles = pl.num_programs(1)

    inv_m = 1.0 / m                       # compile-time constants
    inv_m1 = 1.0 / max(m - 1, 1)          # torch .std() is ddof=1 (unbiased)

    @pl.when((phase == 0) & (tile == 0))
    def _init():
        zeros = jnp.zeros((1, _LANES), jnp.float32)
        acc_sum[...] = zeros
        acc_sq[...] = zeros
        acc_vl[...] = zeros
        acc_ent[...] = zeros
        acc_al[...] = zeros

    # ------------------------- phase 0: reduce ------------------------------
    @pl.when(phase == 0)
    def _reduce():
        ret = ret_ref[...].astype(jnp.float32)
        vpred = vpred_ref[...].astype(jnp.float32)
        values = values_ref[...].astype(jnp.float32)
        ent = ent_ref[...].astype(jnp.float32)

        adv = ret - vpred                 # padded elements are exactly 0
        if use_normalized_advantage:
            # one-pass variance inputs: sum and sum-of-squares, no mask needed
            acc_sum[...] += jnp.sum(adv, axis=0, keepdims=True)
            acc_sq[...] += jnp.sum(adv * adv, axis=0, keepdims=True)

        if use_clipped_value_loss:
            vpc = vpred + jnp.clip(values - vpred, -clip_param, clip_param)
            v_elem = jnp.maximum((values - ret) ** 2, (vpc - ret) ** 2)
        else:
            v_elem = (ret - values) ** 2
        acc_vl[...] += jnp.sum(v_elem, axis=0, keepdims=True)   # padded: 0
        acc_ent[...] += jnp.sum(ent, axis=0, keepdims=True)     # padded: 0

    # ------------------------- phase 1: apply -------------------------------
    @pl.when(phase == 1)
    def _apply():
        ret = ret_ref[...].astype(jnp.float32)
        vpred = vpred_ref[...].astype(jnp.float32)
        logp = logp_ref[...].astype(jnp.float32)
        old_logp = old_logp_ref[...].astype(jnp.float32)

        adv = ret - vpred
        if use_normalized_advantage:
            s1 = jnp.sum(acc_sum[...])
            s2 = jnp.sum(acc_sq[...])
            mean = s1 * inv_m
            # guard tiny negative from cancellation; keep EPS_PPO on std
            var = jnp.maximum((s2 - m * mean * mean) * inv_m1, 0.0)
            scale = 1.0 / (jnp.sqrt(var) + EPS_PPO)   # one scalar divide
            adv_t = (adv - mean) * scale              # then a single vmul
        else:
            adv_t = adv

        if has_padding:
            # Zero the padded tail so (a) adv output is clean and (b) the
            # surrogate terms of padded elements are exactly 0 (ratio*0),
            # removing the need for any other mask in the kernel.
            base = tile * (tile_rows * _LANES)
            row = lax.broadcasted_iota(jnp.int32, (tile_rows, _LANES), 0)
            lane = lax.broadcasted_iota(jnp.int32, (tile_rows, _LANES), 1)
            adv_t = jnp.where(base + row * _LANES + lane < m, adv_t, 0.0)

        adv_ref[...] = adv_t

        ratio = jnp.exp(logp - old_logp)              # EUP slot
        surr1 = ratio * adv_t
        surr2 = jnp.clip(ratio, 1.0 - clip_param, 1.0 + clip_param) * adv_t
        acc_al[...] += jnp.sum(jnp.minimum(surr1, surr2), axis=0, keepdims=True)

        @pl.when(tile == num_tiles - 1)
        def _finalize():
            value_loss = 0.5 * jnp.sum(acc_vl[...]) * inv_m
            action_loss = -jnp.sum(acc_al[...]) * inv_m
            dist_entropy = jnp.sum(acc_ent[...]) * inv_m
            total_loss = (value_loss * value_loss_coef + action_loss
                          - dist_entropy * entropy_coef)
            # Pack the four scalars into one lane-dense slab: a single store.
            lane_id = lax.broadcasted_iota(jnp.int32, (1, _LANES), 1)
            losses_ref[...] = jnp.where(
                lane_id == 0, value_loss,
                jnp.where(lane_id == 1, action_loss,
                          jnp.where(lane_id == 2, dist_entropy, total_loss)))


# ----------------------------------------------------------------------------
# Wrapper
# ----------------------------------------------------------------------------
def _flatten_lane_dense(x, m, p_pad):
    """(T, N) -> (p_pad, 128) lane-dense slab, zero-padded tail.

    Keeps the input dtype (bf16 stays bf16 on the HBM wire); the kernel casts
    to f32 in VMEM.
    """
    flat = x.reshape(-1)
    pad = p_pad * _LANES - m
    if pad:
        # TODO(synk): for the misaligned case, split into an aligned
        # (m//128, 128) view plus a single (row_align, 128) tail block so only
        # the tail is copied (avoids re-copying every stream here and the adv
        # slice copy below).
        flat = jnp.pad(flat, (0, pad))
    return flat.reshape(p_pad, _LANES)


def ppo_fused_update(
    returns,                 # (T+1, N)  rollouts.returns
    value_preds,             # (T+1, N)  rollouts.value_preds
    values,                  # (T, N)    critic output for the minibatch
    action_log_probs,        # (T, N)    new policy log-probs
    old_action_log_probs,    # (T, N)    behavior policy log-probs
    entropy,                 # (T, N)    per-sample entropy
    *,
    clip_param=0.2,
    value_loss_coef=0.5,
    entropy_coef=0.01,
    use_clipped_value_loss=True,
    use_normalized_advantage=True,
    tile_rows=None,
):
    """Fused get_advantages + PPO loss (single-minibatch / full-rollout case).

    Returns (advantages (T, N), value_loss, action_loss, dist_entropy,
    total_loss) — the scalars are 0-d float32 arrays.
    """
    T, N = values.shape
    m = T * N
    p = pl.cdiv(m, _LANES)

    raw = (
        returns[:T],
        value_preds[:T],
        values,
        action_log_probs,
        old_action_log_probs,
        entropy,
    )

    # Row granularity: 8 for f32 streams, 16 if any stream is sub-32-bit.
    row_align = 8
    if any(jnp.dtype(a.dtype).itemsize < 4 for a in raw):
        row_align = 16

    if tile_rows is None:
        tile_rows = _DEFAULT_TILE_ROWS if p > _DEFAULT_TILE_ROWS else p
    tile_rows = max(row_align, -(-tile_rows // row_align) * row_align)
    num_tiles = -(-p // tile_rows)
    p_pad = num_tiles * tile_rows
    has_padding = (p_pad * _LANES) != m

    ins = [_flatten_lane_dense(a, m, p_pad) for a in raw]

    kern = functools.partial(
        _fused_ppo_kernel,
        m=m,
        tile_rows=tile_rows,
        clip_param=float(clip_param),
        value_loss_coef=float(value_loss_coef),
        entropy_coef=float(entropy_coef),
        use_clipped_value_loss=bool(use_clipped_value_loss),
        use_normalized_advantage=bool(use_normalized_advantage),
        has_padding=bool(has_padding),
    )

    # Phase 0 reads (ret, vpred, values, entropy); phase 1 reads
    # (ret, vpred, logp, old_logp) and writes adv.  Streams unused in a phase
    # have their block index pinned to 0 so the pipeline does not keep
    # re-fetching them.
    tile_spec_both = pl.BlockSpec((tile_rows, _LANES), lambda ph, i: (i, 0))
    tile_spec_p0 = pl.BlockSpec((tile_rows, _LANES),
                                lambda ph, i: (i * (1 - ph), 0))
    tile_spec_p1 = pl.BlockSpec((tile_rows, _LANES), lambda ph, i: (i * ph, 0))

    in_specs = [
        tile_spec_both,   # returns[:-1]
        tile_spec_both,   # value_preds[:-1]
        tile_spec_p0,     # values
        tile_spec_p1,     # action_log_probs
        tile_spec_p1,     # old_action_log_probs
        tile_spec_p0,     # entropy
    ]
    out_specs = [
        tile_spec_p1,                                           # advantages
        pl.BlockSpec((1, _LANES), lambda ph, i: (0, 0)),        # packed losses
    ]
    scratch_shapes = [pltpu.VMEM((1, _LANES), jnp.float32)] * 5

    # VMEM budget: 6 double-buffered input tiles + double-buffered adv output
    # tile + tiny losses output + 5 lane-partial scratches, with 2x headroom.
    in_itemsize = sum(jnp.dtype(a.dtype).itemsize for a in ins)
    blk_elems = tile_rows * _LANES
    footprint = (2 * blk_elems * in_itemsize
                 + 2 * blk_elems * 4
                 + 2 * _LANES * 4
                 + 5 * _LANES * 4)
    vmem_limit = int(min(2 * footprint + (2 << 20), 64 << 20))

    # TODO(synk): on v7x, mark the tile axis "parallel" and combine the
    # per-TensorCore lane-partials through CMEM/VMEM_SHARED before phase 1;
    # kept "arbitrary" here so the phase-0 partial sums stay on one core.
    adv_flat, losses = pl.pallas_call(
        kern,
        out_shape=(
            jax.ShapeDtypeStruct((p_pad, _LANES), jnp.float32),
            jax.ShapeDtypeStruct((1, _LANES), jnp.float32),
        ),
        grid_spec=pltpu.PrefetchScalarGridSpec(
            num_scalar_prefetch=0,
            grid=(2, num_tiles),
            in_specs=in_specs,
            out_specs=out_specs,
            scratch_shapes=scratch_shapes,
        ),
        compiler_params=pltpu.CompilerParams(
            dimension_semantics=("arbitrary", "arbitrary"),
            vmem_limit_bytes=vmem_limit,
        ),
    )(*ins)

    adv = adv_flat.reshape(-1)[:m].reshape(T, N)
    return adv, losses[0, 0], losses[0, 1], losses[0, 2], losses[0, 3]


# ----------------------------------------------------------------------------
# Pure-JAX reference (mirrors the PyTorch code exactly)
# ----------------------------------------------------------------------------
def _ref_all(returns, value_preds, values, logp, old_logp, entropy,
             clip_param, vcoef, ecoef, use_clipped_value_loss=True,
             use_normalized_advantage=True):
    adv = returns[:-1] - value_preds[:-1]
    if use_normalized_advantage:
        adv = (adv - adv.mean()) / (adv.std(ddof=1) + EPS_PPO)

    ratio = jnp.exp(logp - old_logp)
    surr1 = ratio * adv
    surr2 = jnp.clip(ratio, 1.0 - clip_param, 1.0 + clip_param) * adv
    action_loss = -jnp.minimum(surr1, surr2).mean()

    vpred = value_preds[:-1]
    ret = returns[:-1]
    if use_clipped_value_loss:
        vpc = vpred + jnp.clip(values - vpred, -clip_param, clip_param)
        value_loss = 0.5 * jnp.maximum((values - ret) ** 2,
                                       (vpc - ret) ** 2).mean()
    else:
        value_loss = 0.5 * ((ret - values) ** 2).mean()

    dist_entropy = entropy.mean()
    total = value_loss * vcoef + action_loss - dist_entropy * ecoef
    return adv, value_loss, action_loss, dist_entropy, total


def _run_case(key, T, N, clip_param, vcoef, ecoef, *, tile_rows=None,
              use_normalized_advantage=True, use_clipped_value_loss=True):
    ks = jax.random.split(key, 6)
    returns = jax.random.normal(ks[0], (T + 1, N), jnp.float32)
    value_preds = jax.random.normal(ks[1], (T + 1, N), jnp.float32)
    values = jax.random.normal(ks[2], (T, N), jnp.float32)
    old_logp = -jnp.abs(jax.random.normal(ks[3], (T, N), jnp.float32))
    logp = old_logp + 0.1 * jax.random.normal(ks[4], (T, N), jnp.float32)
    entropy = jnp.abs(jax.random.normal(ks[5], (T, N), jnp.float32))

    out = ppo_fused_update(
        returns, value_preds, values, logp, old_logp, entropy,
        clip_param=clip_param, value_loss_coef=vcoef, entropy_coef=ecoef,
        use_clipped_value_loss=use_clipped_value_loss,
        use_normalized_advantage=use_normalized_advantage,
        tile_rows=tile_rows,
    )
    jax.block_until_ready(out)
    adv, vloss, aloss, ent_m, total = out

    adv_r, vloss_r, aloss_r, ent_r, total_r = _ref_all(
        returns, value_preds, values, logp, old_logp, entropy,
        clip_param, vcoef, ecoef,
        use_clipped_value_loss=use_clipped_value_loss,
        use_normalized_advantage=use_normalized_advantage,
    )

    assert jnp.allclose(adv, adv_r, rtol=1e-5, atol=1e-5)
    assert jnp.allclose(vloss, vloss_r, rtol=1e-5, atol=1e-5)
    assert jnp.allclose(aloss, aloss_r, rtol=1e-5, atol=1e-5)
    assert jnp.allclose(ent_m, ent_r, rtol=1e-5, atol=1e-5)
    assert jnp.allclose(total, total_r, rtol=1e-5, atol=1e-5)


if __name__ == "__main__":
    clip_param, value_loss_coef, entropy_coef = 0.2, 0.5, 0.01
    key = jax.random.PRNGKey(0)
    k1, k2, k3, k4, k5 = jax.random.split(key, 5)

    # Case 1: T*N exact multiple of 128, single tile (no padding path).
    _run_case(k1, T=8, N=16, clip_param=clip_param,
              vcoef=value_loss_coef, ecoef=entropy_coef)
    # Case 2: T*N not a multiple of 128 (padded tail, single tile).
    _run_case(k2, T=7, N=10, clip_param=clip_param,
              vcoef=value_loss_coef, ecoef=entropy_coef)
    # Case 3: multi-tile two-phase pipeline (aligned), tiny tile to force it.
    _run_case(k3, T=40, N=64, clip_param=clip_param,
              vcoef=value_loss_coef, ecoef=entropy_coef, tile_rows=8)
    # Case 4: multi-tile with padded last tile.
    _run_case(k4, T=33, N=50, clip_param=clip_param,
              vcoef=value_loss_coef, ecoef=entropy_coef, tile_rows=8)
    # Case 5: un-normalized advantage branch.
    _run_case(k5, T=8, N=16, clip_param=clip_param,
              vcoef=value_loss_coef, ecoef=entropy_coef,
              use_normalized_advantage=False)

    # TODO(synk): actor_critic.evaluate_actions, Adam optimizer.step(),
    # backward()/autograd, clip_grad_norm_, the recurrent minibatch generator
    # and the optional aux BCE/MSE heads are external-network /
    # training-infrastructure ops; their outputs are modeled as kernel inputs.
    print("KERNEL_OK")
</pallas_src>

<mosaic_0001>
module attributes {stable_mosaic.version = 11 : i64} {
  func.func @_fused_ppo_kernel(%arg0: i32, %arg1: i32, %arg2: memref<8x128xf32, #tpu.memory_space<vmem>>, %arg3: memref<8x128xf32, #tpu.memory_space<vmem>>, %arg4: memref<8x128xf32, #tpu.memory_space<vmem>>, %arg5: memref<8x128xf32, #tpu.memory_space<vmem>>, %arg6: memref<8x128xf32, #tpu.memory_space<vmem>>, %arg7: memref<8x128xf32, #tpu.memory_space<vmem>>, %arg8: memref<8x128xf32, #tpu.memory_space<vmem>>, %arg9: memref<1x128xf32, #tpu.memory_space<vmem>>, %arg10: memref<1x128xf32, #tpu.memory_space<vmem>>, %arg11: memref<1x128xf32, #tpu.memory_space<vmem>>, %arg12: memref<1x128xf32, #tpu.memory_space<vmem>>, %arg13: memref<1x128xf32, #tpu.memory_space<vmem>>, %arg14: memref<1x128xf32, #tpu.memory_space<vmem>>) attributes {dimension_semantics = [#tpu.dimension_semantics<arbitrary>, #tpu.dimension_semantics<arbitrary>], iteration_bounds = array<i64: 2, 1>, scalar_prefetch = 0 : i64, scratch_operands = 5 : i64, tpu.core_type = #tpu.core_type<tc>, window_params = [{transform_indices = @transform_0, window_bounds = array<i64: 8, 128>}, {transform_indices = @transform_1, window_bounds = array<i64: 8, 128>}, {transform_indices = @transform_2, window_bounds = array<i64: 8, 128>}, {transform_indices = @transform_3, window_bounds = array<i64: 8, 128>}, {transform_indices = @transform_4, window_bounds = array<i64: 8, 128>}, {transform_indices = @transform_5, window_bounds = array<i64: 8, 128>}, {transform_indices = @transform_6, window_bounds = array<i64: 8, 128>}, {pipeline_mode = #tpu.pipeline_mode<synchronous>, transform_indices = @transform_7, window_bounds = array<i64: 1, 128>}]} {
    %c0_i32 = arith.constant 0 : i32
    %0 = arith.cmpi eq, %arg0, %c0_i32 : i32
    %c0_i32_0 = arith.constant 0 : i32
    %1 = arith.cmpi eq, %arg1, %c0_i32_0 : i32
    %2 = arith.andi %0, %1 : i1
    %3 = arith.extui %2 : i1 to i32
    %c0_i32_1 = arith.constant 0 : i32
    %4 = arith.cmpi ne, %3, %c0_i32_1 : i32
    scf.if %4 {
      %cst = arith.constant 0.000000e+00 : f32
      %11 = vector.broadcast %cst : f32 to vector<1x128xf32>
      %c0 = arith.constant 0 : index
      %c0_5 = arith.constant 0 : index
      %12 = vector.load %arg10[%c0, %c0_5] : memref<1x128xf32, #tpu.memory_space<vmem>>, vector<1x128xf32>
      tpu.vector_store %arg10[%c0, %c0_5], %11 {strides = array<i32>} : memref<1x128xf32, #tpu.memory_space<vmem>>, vector<1x128xf32>,
      %c0_6 = arith.constant 0 : index
      %c0_7 = arith.constant 0 : index
      %13 = vector.load %arg11[%c0_6, %c0_7] : memref<1x128xf32, #tpu.memory_space<vmem>>, vector<1x128xf32>
      tpu.vector_store %arg11[%c0_6, %c0_7], %11 {strides = array<i32>} : memref<1x128xf32, #tpu.memory_space<vmem>>, vector<1x128xf32>,
      %c0_8 = arith.constant 0 : index
      %c0_9 = arith.constant 0 : index
      %14 = vector.load %arg12[%c0_8, %c0_9] : memref<1x128xf32, #tpu.memory_space<vmem>>, vector<1x128xf32>
      tpu.vector_store %arg12[%c0_8, %c0_9], %11 {strides = array<i32>} : memref<1x128xf32, #tpu.memory_space<vmem>>, vector<1x128xf32>,
      %c0_10 = arith.constant 0 : index
      %c0_11 = arith.constant 0 : index
      %15 = vector.load %arg13[%c0_10, %c0_11] : memref<1x128xf32, #tpu.memory_space<vmem>>, vector<1x128xf32>
      tpu.vector_store %arg13[%c0_10, %c0_11], %11 {strides = array<i32>} : memref<1x128xf32, #tpu.memory_space<vmem>>, vector<1x128xf32>,
      %c0_12 = arith.constant 0 : index
      %c0_13 = arith.constant 0 : index
      %16 = vector.load %arg14[%c0_12, %c0_13] : memref<1x128xf32, #tpu.memory_space<vmem>>, vector<1x128xf32>
      tpu.vector_store %arg14[%c0_12, %c0_13], %11 {strides = array<i32>} : memref<1x128xf32, #tpu.memory_space<vmem>>, vector<1x128xf32>,
    } else {
    }
    %c0_i32_2 = arith.constant 0 : i32
    %5 = arith.cmpi eq, %arg0, %c0_i32_2 : i32
    %6 = arith.extui %5 : i1 to i32
    %c0_i32_3 = arith.constant 0 : i32
    %7 = arith.cmpi ne, %6, %c0_i32_3 : i32
    scf.if %7 {
      %c0 = arith.constant 0 : index
      %c0_5 = arith.constant 0 : index
      %11 = vector.load %arg2[%c0, %c0_5] : memref<8x128xf32, #tpu.memory_space<vmem>>, vector<8x128xf32>
      %c0_6 = arith.constant 0 : index
      %c0_7 = arith.constant 0 : index
      %12 = vector.load %arg3[%c0_6, %c0_7] : memref<8x128xf32, #tpu.memory_space<vmem>>, vector<8x128xf32>
      %c0_8 = arith.constant 0 : index
      %c0_9 = arith.constant 0 : index
      %13 = vector.load %arg4[%c0_8, %c0_9] : memref<8x128xf32, #tpu.memory_space<vmem>>, vector<8x128xf32>
      %c0_10 = arith.constant 0 : index
      %c0_11 = arith.constant 0 : index
      %14 = vector.load %arg7[%c0_10, %c0_11] : memref<8x128xf32, #tpu.memory_space<vmem>>, vector<8x128xf32>
      %15 = arith.subf %11, %12 : vector<8x128xf32>
      %c0_12 = arith.constant 0 : index
      %c0_13 = arith.constant 0 : index
      %16 = vector.load %arg10[%c0_12, %c0_13] : memref<1x128xf32, #tpu.memory_space<vmem>>, vector<1x128xf32>
      %cst = arith.constant dense<0.000000e+00> : vector<128xf32>
      %17 = vector.multi_reduction <add>, %15, %cst [0] : vector<8x128xf32> to vector<128xf32>
      %18 = vector.shape_cast %17 : vector<128xf32> to vector<1x128xf32>
      %19 = arith.addf %16, %18 : vector<1x128xf32>
      %c0_14 = arith.constant 0 : index
      %c0_15 = arith.constant 0 : index
      %20 = vector.load %arg10[%c0_14, %c0_15] : memref<1x128xf32, #tpu.memory_space<vmem>>, vector<1x128xf32>
      tpu.vector_store %arg10[%c0_14, %c0_15], %19 {strides = array<i32>} : memref<1x128xf32, #tpu.memory_space<vmem>>, vector<1x128xf32>,
      %c0_16 = arith.constant 0 : index
      %c0_17 = arith.constant 0 : index
      %21 = vector.load %arg11[%c0_16, %c0_17] : memref<1x128xf32, #tpu.memory_space<vmem>>, vector<1x128xf32>
      %22 = arith.mulf %15, %15 : vector<8x128xf32>
      %cst_18 = arith.constant dense<0.000000e+00> : vector<128xf32>
      %23 = vector.multi_reduction <add>, %22, %cst_18 [0] : vector<8x128xf32> to vector<128xf32>
      %24 = vector.shape_cast %23 : vector<128xf32> to vector<1x128xf32>
      %25 = arith.addf %21, %24 : vector<1x128xf32>
      %c0_19 = arith.constant 0 : index
      %c0_20 = arith.constant 0 : index
      %26 = vector.load %arg11[%c0_19, %c0_20] : memref<1x128xf32, #tpu.memory_space<vmem>>, vector<1x128xf32>
      tpu.vector_store %arg11[%c0_19, %c0_20], %25 {strides = array<i32>} : memref<1x128xf32, #tpu.memory_space<vmem>>, vector<1x128xf32>,
      %27 = arith.subf %13, %12 : vector<8x128xf32>
      %cst_21 = arith.constant -2.000000e-01 : f32
      %cst_22 = arith.constant 2.000000e-01 : f32
      %28 = vector.broadcast %cst_21 : f32 to vector<8x128xf32>
      %29 = arith.maximumf %28, %27 : vector<8x128xf32>
      %30 = vector.broadcast %cst_22 : f32 to vector<8x128xf32>
      %31 = arith.minimumf %30, %29 : vector<8x128xf32>
      %32 = arith.addf %12, %31 : vector<8x128xf32>
      %33 = arith.subf %13, %11 : vector<8x128xf32>
      %34 = arith.mulf %33, %33 : vector<8x128xf32>
      %35 = arith.subf %32, %11 : vector<8x128xf32>
      %36 = arith.mulf %35, %35 : vector<8x128xf32>
      %37 = arith.maximumf %34, %36 : vector<8x128xf32>
      %c0_23 = arith.constant 0 : index
      %c0_24 = arith.constant 0 : index
      %38 = vector.load %arg12[%c0_23, %c0_24] : memref<1x128xf32, #tpu.memory_space<vmem>>, vector<1x128xf32>
      %cst_25 = arith.constant dense<0.000000e+00> : vector<128xf32>
      %39 = vector.multi_reduction <add>, %37, %cst_25 [0] : vector<8x128xf32> to vector<128xf32>
      %40 = vector.shape_cast %39 : vector<128xf32> to vector<1x128xf32>
      %41 = arith.addf %38, %40 : vector<1x128xf32>
      %c0_26 = arith.constant 0 : index
      %c0_27 = arith.constant 0 : index
      %42 = vector.load %arg12[%c0_26, %c0_27] : memref<1x128xf32, #tpu.memory_space<vmem>>, vector<1x128xf32>
      tpu.vector_store %arg12[%c0_26, %c0_27], %41 {strides = array<i32>} : memref<1x128xf32, #tpu.memory_space<vmem>>, vector<1x128xf32>,
      %c0_28 = arith.constant 0 : index
      %c0_29 = arith.constant 0 : index
      %43 = vector.load %arg13[%c0_28, %c0_29] : memref<1x128xf32, #tpu.memory_space<vmem>>, vector<1x128xf32>
      %cst_30 = arith.constant dense<0.000000e+00> : vector<128xf32>
      %44 = vector.multi_reduction <add>, %14, %cst_30 [0] : vector<8x128xf32> to vector<128xf32>
      %45 = vector.shape_cast %44 : vector<128xf32> to vector<1x128xf32>
      %46 = arith.addf %43, %45 : vector<1x128xf32>
      %c0_31 = arith.constant 0 : index
      %c0_32 = arith.constant 0 : index
      %47 = vector.load %arg13[%c0_31, %c0_32] : memref<1x128xf32, #tpu.memory_space<vmem>>, vector<1x128xf32>
      tpu.vector_store %arg13[%c0_31, %c0_32], %46 {strides = array<i32>} : memref<1x128xf32, #tpu.memory_space<vmem>>, vector<1x128xf32>,
    } else {
    }
    %c1_i32 = arith.constant 1 : i32
    %8 = arith.cmpi eq, %arg0, %c1_i32 : i32
    %9 = arith.extui %8 : i1 to i32
    %c0_i32_4 = arith.constant 0 : i32
    %10 = arith.cmpi ne, %9, %c0_i32_4 : i32
    scf.if %10 {
      %c0 = arith.constant 0 : index
      %c0_5 = arith.constant 0 : index
      %11 = vector.load %arg2[%c0, %c0_5] : memref<8x128xf32, #tpu.memory_space<vmem>>, vector<8x128xf32>
      %c0_6 = arith.constant 0 : index
      %c0_7 = arith.constant 0 : index
      %12 = vector.load %arg3[%c0_6, %c0_7] : memref<8x128xf32, #tpu.memory_space<vmem>>, vector<8x128xf32>
      %c0_8 = arith.constant 0 : index
      %c0_9 = arith.constant 0 : index
      %13 = vector.load %arg5[%c0_8, %c0_9] : memref<8x128xf32, #tpu.memory_space<vmem>>, vector<8x128xf32>
      %c0_10 = arith.constant 0 : index
      %c0_11 = arith.constant 0 : index
      %14 = vector.load %arg6[%c0_10, %c0_11] : memref<8x128xf32, #tpu.memory_space<vmem>>, vector<8x128xf32>
      %15 = arith.subf %11, %12 : vector<8x128xf32>
      %c0_12 = arith.constant 0 : index
      %c0_13 = arith.constant 0 : index
      %16 = vector.load %arg10[%c0_12, %c0_13] : memref<1x128xf32, #tpu.memory_space<vmem>>, vector<1x128xf32>
      %17 = vector.shape_cast %16 : vector<1x128xf32> to vector<1x1x128xf32>
      %cst = arith.constant dense<0.000000e+00> : vector<1xf32>
      %18 = vector.multi_reduction <add>, %17, %cst [1, 2] : vector<1x1x128xf32> to vector<1xf32>
      %19 = vector.shape_cast %18 : vector<1xf32> to vector<1x1x1xf32>
      %20 = vector.extract %19[0, 0, 0] : f32 from vector<1x1x1xf32>
      %c0_14 = arith.constant 0 : index
      %c0_15 = arith.constant 0 : index
      %21 = vector.load %arg11[%c0_14, %c0_15] : memref<1x128xf32, #tpu.memory_space<vmem>>, vector<1x128xf32>
      %22 = vector.shape_cast %21 : vector<1x128xf32> to vector<1x1x128xf32>
      %cst_16 = arith.constant dense<0.000000e+00> : vector<1xf32>
      %23 = vector.multi_reduction <add>, %22, %cst_16 [1, 2] : vector<1x1x128xf32> to vector<1xf32>
      %24 = vector.shape_cast %23 : vector<1xf32> to vector<1x1x1xf32>
      %25 = vector.extract %24[0, 0, 0] : f32 from vector<1x1x1xf32>
      %cst_17 = arith.constant 7.812500e-03 : f32
      %26 = arith.mulf %20, %cst_17 : f32
      %cst_18 = arith.constant 1.280000e+02 : f32
      %27 = arith.mulf %cst_18, %26 : f32
      %28 = arith.mulf %27, %26 : f32
      %29 = arith.subf %25, %28 : f32
      %cst_19 = arith.constant 0.00787401571 : f32
      %30 = arith.mulf %29, %cst_19 : f32
      %cst_20 = arith.constant 0.000000e+00 : f32
      %31 = arith.maximumf %30, %cst_20 : f32
      %32 = math.sqrt %31 : f32
      %cst_21 = arith.constant 9.99999974E-6 : f32
      %33 = arith.addf %32, %cst_21 : f32
      %cst_22 = arith.constant 1.000000e+00 : f32
      %34 = arith.divf %cst_22, %33 : f32
      %35 = vector.broadcast %26 : f32 to vector<8x128xf32>
      %36 = arith.subf %15, %35 : vector<8x128xf32>
      %37 = vector.broadcast %34 : f32 to vector<8x128xf32>
      %38 = arith.mulf %36, %37 : vector<8x128xf32>
      %c1024_i32 = arith.constant 1024 : i32
      %39 = arith.muli %arg1, %c1024_i32 : i32
      %40 = tpu.iota {dimensions = array<i32: 0>} : vector<8x128xi32>
      %41 = tpu.iota {dimensions = array<i32: 1>} : vector<8x128xi32>
      %c128_i32 = arith.constant 128 : i32
      %42 = vector.broadcast %c128_i32 : i32 to vector<8x128xi32>
      %43 = arith.muli %40, %42 : vector<8x128xi32>
      %44 = vector.broadcast %39 : i32 to vector<8x128xi32>
      %45 = arith.addi %44, %43 : vector<8x128xi32>
      %46 = arith.addi %45, %41 : vector<8x128xi32>
      %c128_i32_23 = arith.constant 128 : i32
      %47 = vector.broadcast %c128_i32_23 : i32 to vector<8x128xi32>
      %48 = arith.cmpi slt, %46, %47 : vector<8x128xi32>
      %cst_24 = arith.constant 0.000000e+00 : f32
      %49 = vector.broadcast %cst_24 : f32 to vector<8x128xf32>
      %50 = arith.select %48, %38, %49 : vector<8x128xi1>, vector<8x128xf32>
      %c0_25 = arith.constant 0 : index
      %c0_26 = arith.constant 0 : index
      %51 = vector.load %arg8[%c0_25, %c0_26] : memref<8x128xf32, #tpu.memory_space<vmem>>, vector<8x128xf32>
      tpu.vector_store %arg8[%c0_25, %c0_26], %50 {strides = array<i32>} : memref<8x128xf32, #tpu.memory_space<vmem>>, vector<8x128xf32>,
      %52 = arith.subf %13, %14 : vector<8x128xf32>
      %53 = math.exp %52 : vector<8x128xf32>
      %54 = arith.mulf %53, %50 : vector<8x128xf32>
      %cst_27 = arith.constant 8.000000e-01 : f32
      %cst_28 = arith.constant 1.200000e+00 : f32
      %55 = vector.broadcast %cst_27 : f32 to vector<8x128xf32>
      %56 = arith.maximumf %55, %53 : vector<8x128xf32>
      %57 = vector.broadcast %cst_28 : f32 to vector<8x128xf32>
      %58 = arith.minimumf %57, %56 : vector<8x128xf32>
      %59 = arith.mulf %58, %50 : vector<8x128xf32>
      %c0_29 = arith.constant 0 : index
      %c0_30 = arith.constant 0 : index
      %60 = vector.load %arg14[%c0_29, %c0_30] : memref<1x128xf32, #tpu.memory_space<vmem>>, vector<1x128xf32>
      %61 = arith.minimumf %54, %59 : vector<8x128xf32>
      %cst_31 = arith.constant dense<0.000000e+00> : vector<128xf32>
      %62 = vector.multi_reduction <add>, %61, %cst_31 [0] : vector<8x128xf32> to vector<128xf32>
      %63 = vector.shape_cast %62 : vector<128xf32> to vector<1x128xf32>
      %64 = arith.addf %60, %63 : vector<1x128xf32>
      %c0_32 = arith.constant 0 : index
      %c0_33 = arith.constant 0 : index
      %65 = vector.load %arg14[%c0_32, %c0_33] : memref<1x128xf32, #tpu.memory_space<vmem>>, vector<1x128xf32>
      tpu.vector_store %arg14[%c0_32, %c0_33], %64 {strides = array<i32>} : memref<1x128xf32, #tpu.memory_space<vmem>>, vector<1x128xf32>,
      %c0_i32_34 = arith.constant 0 : i32
      %66 = arith.cmpi eq, %arg1, %c0_i32_34 : i32
      %67 = arith.extui %66 : i1 to i32
      %c0_i32_35 = arith.constant 0 : i32
      %68 = arith.cmpi ne, %67, %c0_i32_35 : i32
      scf.if %68 {
        %c0_36 = arith.constant 0 : index
        %c0_37 = arith.constant 0 : index
        %69 = vector.load %arg12[%c0_36, %c0_37] : memref<1x128xf32, #tpu.memory_space<vmem>>, vector<1x128xf32>
        %70 = vector.shape_cast %69 : vector<1x128xf32> to vector<1x1x128xf32>
        %cst_38 = arith.constant dense<0.000000e+00> : vector<1xf32>
        %71 = vector.multi_reduction <add>, %70, %cst_38 [1, 2] : vector<1x1x128xf32> to vector<1xf32>
        %72 = vector.shape_cast %71 : vector<1xf32> to vector<1x1x1xf32>
        %73 = vector.extract %72[0, 0, 0] : f32 from vector<1x1x1xf32>
        %cst_39 = arith.constant 5.000000e-01 : f32
        %74 = arith.mulf %cst_39, %73 : f32
        %cst_40 = arith.constant 7.812500e-03 : f32
        %75 = arith.mulf %74, %cst_40 : f32
        %c0_41 = arith.constant 0 : index
        %c0_42 = arith.constant 0 : index
        %76 = vector.load %arg14[%c0_41, %c0_42] : memref<1x128xf32, #tpu.memory_space<vmem>>, vector<1x128xf32>
        %77 = vector.shape_cast %76 : vector<1x128xf32> to vector<1x1x128xf32>
        %cst_43 = arith.constant dense<0.000000e+00> : vector<1xf32>
        %78 = vector.multi_reduction <add>, %77, %cst_43 [1, 2] : vector<1x1x128xf32> to vector<1xf32>
        %79 = vector.shape_cast %78 : vector<1xf32> to vector<1x1x1xf32>
        %80 = vector.extract %79[0, 0, 0] : f32 from vector<1x1x1xf32>
        %cst_44 = arith.constant 0.000000e+00 : f32
        %81 = arith.subf %cst_44, %80 : f32
        %cst_45 = arith.constant 7.812500e-03 : f32
        %82 = arith.mulf %81, %cst_45 : f32
        %c0_46 = arith.constant 0 : index
        %c0_47 = arith.constant 0 : index
        %83 = vector.load %arg13[%c0_46, %c0_47] : memref<1x128xf32, #tpu.memory_space<vmem>>, vector<1x128xf32>
        %84 = vector.shape_cast %83 : vector<1x128xf32> to vector<1x1x128xf32>
        %cst_48 = arith.constant dense<0.000000e+00> : vector<1xf32>
        %85 = vector.multi_reduction <add>, %84, %cst_48 [1, 2] : vector<1x1x128xf32> to vector<1xf32>
        %86 = vector.shape_cast %85 : vector<1xf32> to vector<1x1x1xf32>
        %87 = vector.extract %86[0, 0, 0] : f32 from vector<1x1x1xf32>
        %cst_49 = arith.constant 7.812500e-03 : f32
        %88 = arith.mulf %87, %cst_49 : f32
        %cst_50 = arith.constant 5.000000e-01 : f32
        %89 = arith.mulf %75, %cst_50 : f32
        %90 = arith.addf %89, %82 : f32
        %cst_51 = arith.constant 0.00999999977 : f32
        %91 = arith.mulf %88, %cst_51 : f32
        %92 = arith.subf %90, %91 : f32
        %93 = tpu.iota {dimensions = array<i32: 1>} : vector<1x128xi32>
        %c0_i32_52 = arith.constant 0 : i32
        %94 = vector.broadcast %c0_i32_52 : i32 to vector<1x128xi32>
        %95 = arith.cmpi eq, %93, %94 : vector<1x128xi32>
        %c1_i32_53 = arith.constant 1 : i32
        %96 = vector.broadcast %c1_i32_53 : i32 to vector<1x128xi32>
        %97 = arith.cmpi eq, %93, %96 : vector<1x128xi32>
        %c2_i32 = arith.constant 2 : i32
        %98 = vector.broadcast %c2_i32 : i32 to vector<1x128xi32>
        %99 = arith.cmpi eq, %93, %98 : vector<1x128xi32>
        %100 = vector.broadcast %88 : f32 to vector<1x128xf32>
        %101 = vector.broadcast %92 : f32 to vector<1x128xf32>
        %102 = arith.select %99, %100, %101 : vector<1x128xi1>, vector<1x128xf32>
        %103 = vector.broadcast %82 : f32 to vector<1x128xf32>
        %104 = arith.select %97, %103, %102 : vector<1x128xi1>, vector<1x128xf32>
        %105 = vector.broadcast %75 : f32 to vector<1x128xf32>
        %106 = arith.select %95, %105, %104 : vector<1x128xi1>, vector<1x128xf32>
        %c0_54 = arith.constant 0 : index
        %c0_55 = arith.constant 0 : index
        %107 = vector.load %arg9[%c0_54, %c0_55] : memref<1x128xf32, #tpu.memory_space<vmem>>, vector<1x128xf32>
        tpu.vector_store %arg9[%c0_54, %c0_55], %106 {strides = array<i32>} : memref<1x128xf32, #tpu.memory_space<vmem>>, vector<1x128xf32>,
      } else {
      }
    } else {
    }
    return
  }
  func.func @transform_0(%arg0: i32, %arg1: i32) -> (i32, i32) {
    %c0_i32 = arith.constant 0 : i32
    %c0_i32_0 = arith.constant 0 : i32
    return %arg1, %c0_i32 : i32, i32
  }
  func.func @transform_1(%arg0: i32, %arg1: i32) -> (i32, i32) {
    %c0_i32 = arith.constant 0 : i32
    %c0_i32_0 = arith.constant 0 : i32
    return %arg1, %c0_i32 : i32, i32
  }
  func.func @transform_2(%arg0: i32, %arg1: i32) -> (i32, i32) {
    %c1_i32 = arith.constant 1 : i32
    %0 = arith.subi %c1_i32, %arg0 : i32
    %1 = arith.muli %arg1, %0 : i32
    %c0_i32 = arith.constant 0 : i32
    %c0_i32_0 = arith.constant 0 : i32
    return %1, %c0_i32 : i32, i32
  }
  func.func @transform_3(%arg0: i32, %arg1: i32) -> (i32, i32) {
    %0 = arith.muli %arg1, %arg0 : i32
    %c0_i32 = arith.constant 0 : i32
    %c0_i32_0 = arith.constant 0 : i32
    return %0, %c0_i32 : i32, i32
  }
  func.func @transform_4(%arg0: i32, %arg1: i32) -> (i32, i32) {
    %0 = arith.muli %arg1, %arg0 : i32
    %c0_i32 = arith.constant 0 : i32
    %c0_i32_0 = arith.constant 0 : i32
    return %0, %c0_i32 : i32, i32
  }
  func.func @transform_5(%arg0: i32, %arg1: i32) -> (i32, i32) {
    %c1_i32 = arith.constant 1 : i32
    %0 = arith.subi %c1_i32, %arg0 : i32
    %1 = arith.muli %arg1, %0 : i32
    %c0_i32 = arith.constant 0 : i32
    %c0_i32_0 = arith.constant 0 : i32
    return %1, %c0_i32 : i32, i32
  }
  func.func @transform_6(%arg0: i32, %arg1: i32) -> (i32, i32) {
    %0 = arith.muli %arg1, %arg0 : i32
    %c0_i32 = arith.constant 0 : i32
    %c0_i32_0 = arith.constant 0 : i32
    return %0, %c0_i32 : i32, i32
  }
  func.func @transform_7(%arg0: i32, %arg1: i32) -> (i32, i32) {
    %c0_i32 = arith.constant 0 : i32
    %c0_i32_0 = arith.constant 0 : i32
    %c0_i32_1 = arith.constant 0 : i32
    return %c0_i32, %c0_i32_0 : i32, i32
  }
}

</mosaic_0001>

<bundles_post_ra>
// kernel: tpu_custom_call.1
= control target key start
LH: loop header
LB: loop body
LE: loop exit
PB: predicated region body
PF: predicated region fallthrough
CT: control target
= control target key end

     0   :  { %13 = vsyncpa [#allocation8], 0  ;;  %s1462_s0 = inlined_call_operand.hbm [shape: f32[8,128], index: 0, kind: input, shape index: {}]   ;;  %s1463_s1 = inlined_call_operand.hbm [shape: f32[8,128], index: 1, kind: input, shape index: {}]   ;;  %s1464_s2 = inlined_call_operand.hbm [shape: f32[8,128], index: 2, kind: input, shape index: {}]   ;;  %s1465_s3 = inlined_call_operand.vmem [shape: f32[8,128], index: 3, kind: input, shape index: {}]   ;;  %s1466_s4 = inlined_call_operand.hbm [shape: f32[8,128], index: 4, kind: input, shape index: {}]   ;;  %s1467_s5 = inlined_call_operand.vmem [shape: f32[8,128], index: 5, kind: input, shape index: {}]   ;;  %s1468_s6 = inlined_call_operand.hbm [shape: f32[8,128], index: 6, kind: output, shape index: {0}]   ;;  %s1469_s7 = inlined_call_operand.hbm [shape: f32[1,128], index: 7, kind: output, shape index: {1}]  }
   0x1   :  { %14 = vsyncpa [#allocation11], 0 }
   0x2   :  { %15 = vsyncpa [#allocation9], 0 }
   0x3   :  { %17 = vsyncpa [#allocation9 + $0x1], 0 }
   0x4   :  { %18 = vsyncpa [#allocation16], 0  ;;  %s1223_s24 = smov 0   ;;  %s1225_s25 = smov 0  }
   0x5   :  { %s1227_s26 = smov 0  }
   0x6 LB: > { %s1239_s27 = sadd.s32 4294967295, %s1173_s26   ;;  %s834_s28 = sadd.s32 4294967294, %s1173_s26   ;;  %s1173_s26 = sphi %s1227_s26, %s24_s26   ;;  %s1169_s25 = sphi %s1225_s25, %s1498_s25   ;;  %s1165_s24 = sphi %s1223_s24, %s1497_s24  }
   0x7   : > { %s36_s29 = sadd.s32 1, %s1169_s25  ;;  %p835_p0 = scmp.ge.s32.totalorder %s1173_s26, 1 }
   0x8   : > { %p38_p1 = scmp.ge.s32.totalorder %s36_s29, 2  ;;  %p258_p2 = scmp.lt.s32.totalorder %s1173_s26, 3 }
   0x9   : > { %p1470_p3 = scmp.eq.s32.totalorder %s1239_s27, 0  ;;  %s1175_s8 = smov [#allocation7]  }
   0xa   : > { %s1500_s29 = smov (%p38_p1, %s36_s29), 0  ;;  %p1248_p4 = pnand %p835_p0, %p258_p2 }
   0xb   : > { %s273_s9 = sshll.u32 %s1175_s8, 4  ;;  %s297_s11 = sand.u32 1, %s1173_s26   ;;  %s274_s9 = int_to_ptr.vmem [resolvable:$true] %s273_s9 }
   0xc   : > { %s1478_s30 = scalar_select %p1248_p4, 1, 0 }
   0xd   : > { %p897_p6 = pneg %p1248_p4  ;;  %s967_s14 = scalar_lea.hbm %s1462_s0, 128 }
   0xe   : > { %p968_p10 = scmp.ne.s32.totalorder %s1462_s0, %s967_s14  ;;  %p974_p0 = scmp.lt.u32.totalorder %s967_s14, %s1462_s0 }
   0xf   : > { %p1258_p8 = pnand %p1470_p3, %p897_p6 }
  0x11   : > { %s1479_s10 = scalar_select %p1258_p8, 1, 0 }
  0x12   : > { %p1472_p11 = pneg %p1258_p8 }
  0x14   : > { %p970_p12 = pnand %p1472_p11, %p968_p10 }
  0x16   : > { %p971_p13 = pneg %p970_p12 }
  0x18   : > { %p976_p1 = pnand %p974_p0, %p971_p13 }
  0x1a   : > { %979 = shalt.err (!%p976_p1)
}
  0x1b   : > { %s980_s19 = scalar_lea.vmem %s274_s9, 128  ;;  %p988_p3 = scmp.lt.s32.totalorder %s274_s9, %s274_s9 }
  0x1c   : > { %p981_p2 = scmp.ne.s32.totalorder %s274_s9, %s980_s19  ;;  %p989_p9 = scmp.lt.s32.totalorder %s980_s19, %s980_s19 }
  0x1e   : > { %p983_p6 = pnand %p981_p2, %p1472_p11  ;;  %p990_p7 = por %p989_p9, %p988_p3 }
  0x20   : > { %p984_p5 = pneg %p983_p6 }
  0x22   : > { %p991_p4 = pnand %p990_p7, %p984_p5 }
  0x24   : > { %994 = shalt.err (!%p991_p4)
}
  0x25   : > { %900 = dma.hbm_to_vmem [thread:$0]  (!%p1258_p8), %s1462_s0, 128, %s274_s9, [#allocation8]  }
  0x26   : > { %s1176_s22 = smov [#allocation12]   ;;  %p1480_p10 = scmp.lt.s32.totalorder %s1173_s26, 2 }
  0x27   : > { %s310_s23 = sshll.u32 %s1176_s22, 4  ;;  %p1481_p12 = scmp.eq.s32.totalorder %s1173_s26, 0  ;;  %s311_s23 = int_to_ptr.vmem [resolvable:$true] %s310_s23 }
  0x28   : > { %s1177_s12 = smov [#allocation10]   ;;  %s1294_s14 = scalar_lea.sflag [#allocation8], %s297_s11 }
  0x29   : > { %p1290_p13 = pnand %p1481_p12, %p1480_p10  ;;  %s286_s13 = sshll.u32 %s1177_s12, 4  ;;  %s287_s13 = int_to_ptr.vmem [resolvable:$true] %s286_s13 }
  0x2a   : > { %s995_s17 = scalar_lea.hbm %s1464_s2, 128 }
  0x2b   : > { %s1482_s8 = scalar_select %p1290_p13, 1, 0 }
  0x2c   : > { %p996_p3 = scmp.ne.s32.totalorder %s1464_s2, %s995_s17  ;;  %p1475_p4 = pneg %p1290_p13 }
  0x2d   : > { %p1002_p9 = scmp.lt.u32.totalorder %s995_s17, %s1464_s2 }
  0x2e   : > { %p998_p5 = pnand %p1475_p4, %p996_p3 }
  0x30   : > { %p999_p7 = pneg %p998_p5 }
  0x32   : > { %p1004_p0 = pnand %p1002_p9, %p999_p7 }
  0x34   : > { %1007 = shalt.err (!%p1004_p0)
}
  0x35   : > { %s1008_s11 = scalar_lea.vmem %s311_s23, 128  ;;  %s1015_s21 = scalar_lea.vmem %s311_s23, 256 }
  0x36   : > { %p1009_p1 = scmp.ne.s32.totalorder %s311_s23, %s1008_s11  ;;  %p1016_p10 = scmp.lt.s32.totalorder %s311_s23, %s311_s23 }
  0x37   : > { %p1017_p12 = scmp.lt.s32.totalorder %s1015_s21, %s1008_s11 }
  0x38   : > { %p1011_p2 = pnand %p1009_p1, %p1475_p4 }
  0x39   : > { %p1018_p11 = por %p1017_p12, %p1016_p10 }
  0x3a   : > { %p1012_p6 = pneg %p1011_p2 }
  0x3c   : > { %p1019_p8 = pnand %p1018_p11, %p1012_p6 }
  0x3e   : > { %1022 = shalt.err (!%p1019_p8)
}
  0x3f   : > { %907 = dma.hbm_to_vmem [thread:$0]  (!%p1290_p13), %s1464_s2, 128, %s311_s23, %s1294_s14  }
  0x40   : > { %s1023_s17 = scalar_lea.hbm %s1463_s1, 128  ;;  %p1483_p5 = scmp.ne.s32.totalorder %s1479_s10, 0 }
  0x41   : > { %p1024_p3 = scmp.ne.s32.totalorder %s1463_s1, %s1023_s17  ;;  %p1030_p9 = scmp.lt.u32.totalorder %s1023_s17, %s1463_s1 }
  0x42   : > { %p1484_p11 = pneg %p1483_p5 }
  0x44   : > { %p1026_p8 = pnand %p1024_p3, %p1484_p11 }
  0x46   : > { %p1027_p7 = pneg %p1026_p8 }
  0x48   : > { %p1032_p0 = pnand %p1030_p9, %p1027_p7 }
  0x4a   : > { %1035 = shalt.err (!%p1032_p0)
}
  0x4b   : > { %s1036_s23 = scalar_lea.vmem %s287_s13, 128  ;;  %p1485_p2 = pmov %p1484_p11 }
  0x4c   : > { %p1037_p1 = scmp.ne.s32.totalorder %s287_s13, %s1036_s23  ;;  %p1044_p12 = scmp.lt.s32.totalorder %s287_s13, %s287_s13 }
  0x4d   : > { %p1045_p4 = scmp.lt.s32.totalorder %s1036_s23, %s1036_s23 }
  0x4e   : > { %p1039_p6 = pnand %p1037_p1, %p1485_p2 }
  0x4f   : > { %p1046_p13 = por %p1045_p4, %p1044_p12 }
  0x50   : > { %p1040_p10 = pneg %p1039_p6 }
  0x52   : > { %p1047_p3 = pnand %p1046_p13, %p1040_p10 }
  0x54   : > { %1050 = shalt.err (!%p1047_p3)
}
  0x55   : > { %903 = dma.hbm_to_vmem [thread:$0]  (!%p1483_p5), %s1463_s1, 128, %s287_s13, [#allocation11]  }
  0x56   : > { %s1178_s22 = smov [#allocation13]   ;;  %s1051_s17 = scalar_lea.hbm %s1466_s4, 128 }
  0x57   : > { %s338_s12 = sshll.u32 %s1178_s22, 4  ;;  %p1052_p4 = scmp.ne.s32.totalorder %s1466_s4, %s1051_s17  ;;  %s339_s12 = int_to_ptr.vmem [resolvable:$true] %s338_s12 }
  0x58   : > { %p1486_p13 = scmp.ne.s32.totalorder %s1482_s8, 0  ;;  %p1058_p9 = scmp.lt.u32.totalorder %s1051_s17, %s1466_s4 }
  0x5a   : > { %p1487_p11 = pneg %p1486_p13 }
  0x5c   : > { %p1054_p8 = pnand %p1052_p4, %p1487_p11 }
  0x5e   : > { %p1055_p7 = pneg %p1054_p8 }
  0x60   : > { %p1060_p5 = pnand %p1058_p9, %p1055_p7 }
  0x62   : > { %1063 = shalt.err (!%p1060_p5)
}
  0x63   : > { %s1064_s13 = scalar_lea.vmem %s339_s12, 128  ;;  %p1488_p1 = pmov %p1487_p11 }
  0x64   : > { %p1065_p0 = scmp.ne.s32.totalorder %s339_s12, %s1064_s13  ;;  %s1071_s20 = scalar_lea.vmem %s339_s12, 256 }
  0x65   : > { %p1072_p10 = scmp.lt.s32.totalorder %s339_s12, %s339_s12  ;;  %p1073_p12 = scmp.lt.s32.totalorder %s1071_s20, %s1064_s13 }
  0x66   : > { %p1067_p2 = pnand %p1065_p0, %p1488_p1 }
  0x67   : > { %p1074_p3 = por %p1073_p12, %p1072_p10 }
  0x68   : > { %p1068_p6 = pneg %p1067_p2 }
  0x6a   : > { %p1075_p4 = pnand %p1074_p3, %p1068_p6 }
  0x6c   : > { %1078 = shalt.err (!%p1075_p4)
}
  0x6d   : > { %910 = dma.hbm_to_vmem [thread:$0]  (!%p1486_p13), %s1466_s4, 128, %s339_s12, %s1294_s14  }
  0x6e   : > { %p1489_p11 = scmp.ne.s32.totalorder %s1478_s30, 0 }
  0x6f   : > { %p1490_p8 = scmp.eq.s32.totalorder (!%p1489_p11), %s1239_s27, 0 }
  0x70   : > { %358 = sbr.rel (%p1489_p11) target bundleno = 807 (0x327), region = 44 }
  0x77   : > { %1144 = dma.done.wait (%p1490_p8), [#allocation8], 128   ;;  %p1491_p7 = pmov %p1490_p8 }
  0x79   : > { %1146 = vsyncadd (%p1491_p7), [#allocation8], 4294967168  ;;  %p1492_p9 = pmov %p1491_p7 }
  0x7a   : > { %p1493_p5 = pmov %p1491_p7 }
  0x7b   : > { %1148 = dma.done.wait (%p1492_p9), [#allocation11], 128  }
  0x7c   : > { %1150 = vsyncadd (%p1493_p5), [#allocation11], 4294967168  ;;  %s368_s8 = sand.u32 1, %s1239_s27   ;;  %p1494_p13 = pmov %p1493_p5 }
  0x7d   : > { %s369_s21 = scalar_lea.sflag [#allocation8], %s368_s8 }
  0x7e   : > { %1152 = dma.done.wait (%p1494_p13), %s369_s21, 256   ;;  %p1495_p0 = pmov %p1493_p5 }
  0x7f   : > { %p446_p1 = scmp.eq.s32.totalorder %s1165_s24, 0 }
  0x80   : > { %1154 = vsyncadd (%p1495_p0), %s369_s21, 4294967040  ;;  %v1179_v0 = vmov (%p446_p1), 0.0  }
  0x81   : > { %451 = sbr.rel (!%p446_p1) target bundleno = 136 (0x88), region = 64  ;;  %452 = vst [vmem:[#allocation2] sm:$0x1] (%p446_p1), %v1179_v0  ;;  %453 = vst [vmem:[#allocation3] sm:$0x1] (%p446_p1), %v1179_v0 }
  0x82   : > { %454 = vst [vmem:[#allocation4] sm:$0x1] (%p446_p1), %v1179_v0  ;;  %455 = vst [vmem:[#allocation5] sm:$0x1] (%p446_p1), %v1179_v0 }
  0x83   : > { %456 = vst [vmem:[#allocation6] sm:$0x1] (%p446_p1), %v1179_v0 }
  0x88 PF: > { %p849_p2 = scmp.ne.s32.totalorder %s1165_s24, 0 }
  0x89   : > { %v460_v1 = vld [vmem:[#allocation7] sm:$0xff] (!%p849_p2)  ;;  %v461_v2 = vld [vmem:[#allocation10] sm:$0xff] (!%p849_p2)  ;;  %v462_v4 = vld [vmem:[#allocation12] sm:$0xff] (!%p849_p2) }
  0x8a   : > { %459 = sbr.rel (%p849_p2) target bundleno = 165 (0xa5), region = 68  ;;  %v464_v3 = vsub.f32 (!%p849_p2), %v460_v1, %v461_v2  ;;  %v484_v5 = vsub.f32 (!%p849_p2), %v462_v4, %v461_v2  ;;  %v463_v6 = vld [vmem:[%s1467_s5] sm:$0xff] (!%p849_p2)  ;;  %v488_v11 = vsub.f32 (!%p849_p2), %v462_v4, %v460_v1 }
  0x8b   : > { %v503_v9 = vrot.slane (!%p849_p2), %v463_v6, 4  ;;  %v465_v28 = vld [vmem:[#allocation2] sm:$0x1] (!%p849_p2)  ;;  %v502_v30 = vld [vmem:[#allocation5] sm:$0x1] (!%p849_p2) }
  0x8c   : > { %v466_v7 = vrot.slane (!%p849_p2), %v464_v3, 4  ;;  %v475_v8 = vmul.f32 (!%p849_p2), %v464_v3, %v464_v3  ;;  %v850_v10 = vclamps-f32 (!%p849_p2), %v484_v5, 0.2  ;;  %v489_v19 = vmul.f32 (!%p849_p2), %v488_v11, %v488_v11  ;;  %v474_v34 = vld [vmem:[#allocation3] sm:$0x1] (!%p849_p2) }
  0x8d   : > { %v504_v14 = vadd.f32 (!%p849_p2), %v503_v9, %v463_v6  ;;  %v493_v44 = vld [vmem:[#allocation4] sm:$0x1] (!%p849_p2) }
  0x8e   : > { %v467_v12 = vadd.f32 (!%p849_p2), %v466_v7, %v464_v3  ;;  %v476_v13 = vrot.slane (!%p849_p2), %v475_v8, 4  ;;  %v487_v15 = vadd.f32 (!%p849_p2), %v850_v10, %v461_v2 }
  0x8f   : > { %v505_v18 = vrot.slane (!%p849_p2), %v504_v14, 2 }
  0x90   : > { %v468_v16 = vrot.slane (!%p849_p2), %v467_v12, 2  ;;  %v477_v17 = vadd.f32 (!%p849_p2), %v476_v13, %v475_v8  ;;  %v490_v20 = vsub.f32 (!%p849_p2), %v487_v15, %v460_v1 }
  0x91   : > { %v506_v23 = vadd.f32 %v505_v18, %v504_v14 }
  0x92   : > { %v469_v21 = vadd.f32 %v468_v16, %v467_v12  ;;  %v478_v22 = vrot.slane %v477_v17, 2  ;;  %v491_v24 = vmul.f32 %v490_v20, %v490_v20 }
  0x93   : > { %v507_v27 = vrot.slane %v506_v23, 1 }
  0x94   : > { %v470_v25 = vrot.slane %v469_v21, 1  ;;  %v479_v26 = vadd.f32 %v478_v22, %v477_v17  ;;  %v492_v29 = vmax.f32 %v489_v19, %v491_v24 }
  0x95   : > { %v508_v33 = vadd.f32 %v507_v27, %v506_v23 }
  0x96   : > { %v471_v31 = vadd.f32 %v470_v25, %v469_v21  ;;  %v480_v32 = vrot.slane %v479_v26, 1  ;;  %v494_v35 = vrot.slane %v492_v29, 4 }
  0x97   : > { %v509_v38 = vadd.f32 %v508_v33, %v502_v30 }
  0x98   : > { %v472_v36 = vadd.f32 %v471_v31, %v465_v28  ;;  %v481_v37 = vadd.f32 %v480_v32, %v479_v26  ;;  %v495_v39 = vadd.f32 %v494_v35, %v492_v29 }
  0x99   : > { %510 = vst [vmem:[#allocation5] sm:$0x1] %v509_v38 }
  0x9a   : > { %473 = vst [vmem:[#allocation2] sm:$0x1] %v472_v36  ;;  %v482_v40 = vadd.f32 %v481_v37, %v474_v34  ;;  %v496_v41 = vrot.slane %v495_v39, 2 }
  0x9c   : > { %483 = vst [vmem:[#allocation3] sm:$0x1] %v482_v40  ;;  %v497_v42 = vadd.f32 %v496_v41, %v495_v39 }
  0x9e   : > { %v498_v43 = vrot.slane %v497_v42, 1 }
  0xa0   : > { %v499_v45 = vadd.f32 %v498_v43, %v497_v42 }
  0xa2   : > { %v500_v46 = vadd.f32 %v499_v45, %v493_v44 }
  0xa4   : > { %501 = vst [vmem:[#allocation4] sm:$0x1] %v500_v46 }
  0xa5 PF: > { %p851_p6 = scmp.ne.s32.totalorder %s1165_s24, 1 }
  0xa6   : > { %v520_v47 = vld [vmem:[#allocation2] sm:$0x1] (!%p851_p6)  ;;  %vm521_vm0 = vcmask (!%p851_p6), 1040384   ;;  %v532_v48 = vld [vmem:[#allocation3] sm:$0x1] (!%p851_p6)  ;;  %s1180_s18 = smov (!%p851_p6), 0.0   ;;  %v567_v17 = vlaneseq (!%p851_p6) }
  0xa7   : > { %514 = sbr.rel (%p851_p6) target bundleno = 761 (0x2f9), region = 72  ;;  %v522_v49 = vsel (!%p851_p6), %vm521_vm0, %v520_v47, 0.0  ;;  %v533_v50 = vsel (!%p851_p6), %vm521_vm0, %v532_v48, 0.0  ;;  %v624_v9 = vld [vmem:[#allocation5] sm:$0x1] (!%p851_p6)  ;;  %v518_v14 = vld [vmem:[#allocation13] sm:$0xff] (!%p851_p6) }
  0xa8   : > { %523 = vadd.xlane.f32.xlu0 (!%p851_p6), %v522_v49  ;;  %v625_v10 = vsel (!%p851_p6), %vm521_vm0, %v624_v9, 0.0  ;;  %v517_v13 = vld [vmem:[%s1465_s3] sm:$0xff] (!%p851_p6)  ;;  %v568_v18 = vshrl.u32 (!%p851_p6), %v567_v17, 7  ;;  %v516_v20 = vld [vmem:[#allocation10] sm:$0xff] (!%p851_p6)  ;;  %v1392_v21 = vand.u32 (!%p851_p6), 127, %v567_v17 }
  0xa9   : > { %v578_v15 = vsub.f32 (!%p851_p6), %v517_v13, %v518_v14  ;;  %v515_v19 = vld [vmem:[#allocation7] sm:$0xff] (!%p851_p6)  ;;  %v585_v41 = vld [vmem:[#allocation6] sm:$0x1] (!%p851_p6) }
  0xaa   : > { %v571_v22 = vmul.u32 (!%p851_p6), 128, %v568_v18  ;;  %v519_v24 = vsub.f32 (!%p851_p6), %v515_v19, %v516_v20  ;;  %vm642_vm4 = vcmp.eq.s32.totalorder (!%p851_p6), %v1392_v21, 2  ;;  %vm641_vm5 = vcmp.eq.s32.totalorder (!%p851_p6), %v1392_v21, 1 }
  0xab   : > { %v598_v7 = vld [vmem:[#allocation4] sm:$0x1] (!%p851_p6)  ;;  %v579_v16 = vmul.f32 (!%p851_p6), 1.442695, %v578_v15  ;;  %vm640_vm6 = vcmp.eq.s32.totalorder (!%p851_p6), %v1392_v21, 0 }
  0xac   : > { %534 = vadd.xlane.f32.xlu0 (!%p851_p6), %v533_v50  ;;  %v599_v8 = vsel (!%p851_p6), %vm521_vm0, %v598_v7, 0.0  ;;  %v574_v26 = vadd.s32 (!%p851_p6), %v571_v22, %v1392_v21 }
  0xad   : > { %600 = vadd.xlane.f32.xlu1 (!%p851_p6), %v599_v8 }
  0xae   : > { %vm575_vm3 = vcmp.lt.s32.totalorder %v574_v26, 128 }
  0xb0   : > { %626 = vadd.xlane.f32.xlu0 %v625_v10 }
 0x135   : > { %v524_v51 = vpop.xlane.xlu0 %523 }
 0x136   : > { %v525_v52 = vrot.slane %v524_v51, 4 }
 0x138   : > { %v526_v53 = vadd.f32 %v525_v52, %v524_v51 }
 0x139   : > { %v535_v54 = vpop.xlane.xlu0 %534 }
 0x13a   : > { %v527_v55 = vrot.slane %v526_v53, 2  ;;  %v536_v56 = vrot.slane %v535_v54, 4  ;;  %v601_v46 = vpop.xlane.xlu1 %600 }
 0x13b   : > { %v602_v47 = vrot.slane %v601_v46, 4 }
 0x13c   : > { %v537_v57 = vadd.f32 %v536_v56, %v535_v54  ;;  %v528_v58 = vadd.f32 %v527_v55, %v526_v53 }
 0x13d   : > { %v603_v48 = vadd.f32 %v602_v47, %v601_v46  ;;  %v627_v53 = vpop.xlane.xlu0 %626 }
 0x13e   : > { %v538_v59 = vrot.slane %v537_v57, 2  ;;  %v529_v60 = vrot.slane %v528_v58, 1  ;;  %v628_v54 = vrot.slane %v627_v53, 4 }
 0x13f   : > { %v604_v49 = vrot.slane %v603_v48, 2 }
 0x140   : > { %v530_v61 = vadd.f32 %v529_v60, %v528_v58  ;;  %v539_v62 = vadd.f32 %v538_v59, %v537_v57  ;;  %v629_v55 = vadd.f32 %v628_v54, %v627_v53 }
 0x141   : > { %v605_v50 = vadd.f32 %v604_v49, %v603_v48 }
 0x142   : > { %859 = vpush %v530_v61  ;;  %v540_v63 = vrot.slane %v539_v62, 1  ;;  %v630_v56 = vrot.slane %v629_v55, 2 }
 0x143   : > { %v606_v51 = vrot.slane %v605_v50, 1 }
 0x144   : > { %v541_v0 = vadd.f32 %v540_v63, %v539_v62  ;;  %v631_v60 = vadd.f32 %v630_v56, %v629_v55 }
 0x145   : > { %v607_v52 = vadd.f32 %v606_v51, %v605_v50 }
 0x146   : > { %861 = vpush %v541_v0  ;;  %v632_v63 = vrot.slane %v631_v60, 1 }
 0x173   : > { %s860_s24 = spop %859 }
 0x174   : > { %s1383_s22 = smul.f32 0.0078125, %s860_s24 }
 0x176   : > { %s544_s12 = smul.f32 128.0, %s1383_s22  ;;  %v562_v25 = vstv %s1383_s22 }
 0x177   : > { %s862_s16 = spop %861  ;;  %v563_v28 = vsub.f32 %v519_v24, %v562_v25 }
 0x178   : > { %s545_s15 = smul.f32 %s544_s12, %s1383_s22 }
 0x17a   : > { %s546_s17 = ssub.f32 %s862_s16, %s545_s15 }
 0x17c   : > { %s547_s9 = smul.f32 0.007874016, %s546_s17 }
 0x17e   : > { %s548_s10 = smax.f32 %s1180_s18, %s547_s9 }
 0x17f   : > { %v549_v1 = vstv %s548_s10 }
 0x180   : > { %961 = vrsqrt.f32 %v549_v1  ;;  %vm552_vm1 = vcmp.eq.f32.partialorder %v549_v1, inf  ;;  %v555_v4 = vand.u32 2147483648, %v549_v1  ;;  %vm554_vm2 = vcmp.eq.f32.partialorder %v549_v1, 0.0 }
 0x18a   : > { %v962_v2 = vpop.eup %961 }
 0x18b   : > { %v551_v3 = vmul.f32 %v962_v2, %v549_v1  ;;  %v633_v2 = vadd.f32 %v632_v63, %v631_v60 }
 0x18d   : > { %v553_v5 = vsel %vm552_vm1, %v549_v1, %v551_v3 }
 0x18e   : > { %v556_v6 = vsel %vm554_vm2, %v555_v4, %v553_v5 }
 0x18f   : > { %863 = vpush %v556_v6 }
 0x1c0   : > { %s864_s19 = spop %863 }
 0x1c1   : > { %s558_s13 = sadd.f32 1e-05, %s864_s19 }
 0x1c3   : > { %v559_v11 = vstv %s558_s13 }
 0x1c4   : > { %963 = vrcp.f32 %v559_v11 }
 0x1c5   : > { %965 = vpow2.f32 %v579_v16 }
 0x1ce   : > { %v964_v12 = vpop.eup %963 }
 0x1cf   : > { %865 = vpush %v964_v12  ;;  %v966_v23 = vpop.eup %965 }
 0x1d0   : > { %v582_v27 = vmax.f32 %v966_v23, 0.8  ;;  %867 = vpush %v607_v52 }
 0x1d2   : > { %v583_v30 = vmin.f32 %v582_v27, 1.2 }
 0x200   : > { %s866_s11 = spop %865 }
 0x201   : > { %v564_v29 = vstv %s866_s11  ;;  %s868_s8 = spop %867 }
 0x202   : > { %v565_v31 = vmul.f32 %v564_v29, %v563_v28  ;;  %s609_s21 = smul.f32 0.5, %s868_s8 }
 0x204   : > { %v576_v32 = vsel %vm575_vm3, %v565_v31, 0.0  ;;  %s610_s30 = smul.f32 0.0078125, %s609_s21 }
 0x205   : > { %577 = vst [vmem:[#allocation14] sm:$0xff] %v576_v32  ;;  %v581_v33 = vmul.f32 %v966_v23, %v576_v32  ;;  %v584_v34 = vmul.f32 %v583_v30, %v576_v32 }
 0x206   : > { %s636_s14 = smul.f32 0.5, %s610_s30  ;;  %v648_v7 = vstv %s610_s30 }
 0x207   : > { %v586_v35 = vmin.f32 %v581_v33, %v584_v34 }
 0x209   : > { %v587_v36 = vrot.slane %v586_v35, 4 }
 0x20b   : > { %v588_v37 = vadd.f32 %v587_v36, %v586_v35 }
 0x20d   : > { %v589_v38 = vrot.slane %v588_v37, 2 }
 0x20f   : > { %v590_v39 = vadd.f32 %v589_v38, %v588_v37 }
 0x211   : > { %v591_v40 = vrot.slane %v590_v39, 1 }
 0x213   : > { %v592_v42 = vadd.f32 %v591_v40, %v590_v39 }
 0x215   : > { %v593_v43 = vadd.f32 %v592_v42, %v585_v41 }
 0x217   : > { %594 = vst [vmem:[#allocation6] sm:$0x1] %v593_v43 }
 0x21e   : > { %v611_v44 = vld [vmem:[#allocation6] sm:$0x1] }
 0x21f   : > { %v612_v45 = vsel %vm521_vm0, %v611_v44, 0.0 }
 0x220   : > { %613 = vadd.xlane.f32.xlu1 %v612_v45 }
 0x2ad   : > { %v614_v57 = vpop.xlane.xlu1 %613 }
 0x2ae   : > { %v615_v58 = vrot.slane %v614_v57, 4 }
 0x2b0   : > { %v616_v59 = vadd.f32 %v615_v58, %v614_v57 }
 0x2b2   : > { %v617_v61 = vrot.slane %v616_v59, 2 }
 0x2b4   : > { %v618_v62 = vadd.f32 %v617_v61, %v616_v59 }
 0x2b6   : > { %v619_v0 = vrot.slane %v618_v62, 1 }
 0x2b8   : > { %v620_v1 = vadd.f32 %v619_v0, %v618_v62 }
 0x2ba   : > { %869 = vpush %v620_v1 }
 0x2bb   : > { %871 = vpush %v633_v2 }
 0x2eb   : > { %s870_s24 = spop %869 }
 0x2ec   : > { %s622_s22 = ssub.f32 0.0, %s870_s24  ;;  %s872_s12 = spop %871 }
 0x2ed   : > { %s635_s15 = smul.f32 0.0078125, %s872_s12 }
 0x2ee   : > { %s623_s16 = smul.f32 0.0078125, %s622_s22 }
 0x2ef   : > { %s638_s9 = smul.f32 0.01, %s635_s15  ;;  %v643_v3 = vstv %s635_s15 }
 0x2f0   : > { %s637_s17 = sadd.f32 %s636_s14, %s623_s16  ;;  %v646_v5 = vstv %s623_s16 }
 0x2f2   : > { %s639_s18 = ssub.f32 %s637_s17, %s638_s9 }
 0x2f4   : > { %v644_v4 = vstv %s639_s18 }
 0x2f5   : > { %v645_v6 = vsel %vm642_vm4, %v643_v3, %v644_v4 }
 0x2f6   : > { %v647_v8 = vsel %vm641_vm5, %v646_v5, %v645_v6 }
 0x2f7   : > { %v649_v9 = vsel %vm640_vm6, %v648_v7, %v647_v8 }
 0x2f8   : > { %650 = vst [vmem:[#allocation15] sm:$0x1] %v649_v9 }
 0x2f9 PF: > { %p924_p10 = scmp.eq.s32.totalorder %s1239_s27, 1  ;;  %s1181_s10 = smov [#allocation14]  }
 0x2fa   : > { %s666_s19 = sshll.u32 %s1181_s10, 4  ;;  %s1182_s13 = smov [#allocation15]   ;;  %s667_s19 = int_to_ptr.vmem [resolvable:$true] %s666_s19 }
 0x2fb   : > { %s677_s20 = sshll.u32 %s1182_s13, 4  ;;  %s1079_s23 = scalar_lea.vmem %s667_s19, 128  ;;  %s1401_s20 = int_to_ptr.vmem [resolvable:$true] %s677_s20 }
 0x2fc   : > { %p1080_p12 = scmp.ne.s32.totalorder %s667_s19, %s1079_s23  ;;  %s1085_s11 = scalar_lea.vmem %s667_s19, 256 }
 0x2fd   : > { %p1086_p11 = scmp.lt.s32.totalorder %s667_s19, %s667_s19  ;;  %p1087_p8 = scmp.lt.s32.totalorder %s1085_s11, %s1079_s23 }
 0x2fe   : > { %p1081_p3 = pnand %p1080_p12, %p924_p10 }
 0x2ff   : > { %p1088_p7 = por %p1087_p8, %p1086_p11 }
 0x300   : > { %p1082_p4 = pneg %p1081_p3 }
 0x302   : > { %p1089_p9 = pnand %p1088_p7, %p1082_p4 }
 0x304   : > { %1092 = shalt.err (!%p1089_p9)
}
 0x305   : > { %s1093_s30 = scalar_lea.hbm %s1468_s6, 128 }
 0x306   : > { %p1094_p5 = scmp.ne.s32.totalorder %s1468_s6, %s1093_s30  ;;  %p1099_p1 = scmp.lt.u32.totalorder %s1093_s30, %s1468_s6 }
 0x308   : > { %p1095_p13 = pnand %p1094_p5, %p924_p10 }
 0x30a   : > { %p1096_p0 = pneg %p1095_p13 }
 0x30c   : > { %p1101_p2 = pnand %p1099_p1, %p1096_p0 }
 0x30e   : > { %1104 = shalt.err (!%p1101_p2)
}
 0x30f   : > { %890 = dma.vmem_to_hbm [thread:$0]  (%p924_p10), %s667_s19, 128, %s1468_s6, [#allocation9]  }
 0x310   : > { %s1105_s17 = scalar_lea.vmem %s1401_s20, 16  ;;  %s1111_s9 = scalar_lea.vmem %s1401_s20, 32 }
 0x311   : > { %p1106_p6 = scmp.ne.s32.totalorder %s1401_s20, %s1105_s17  ;;  %p1112_p4 = scmp.lt.s32.totalorder %s1401_s20, %s1401_s20 }
 0x312   : > { %p1113_p11 = scmp.lt.s32.totalorder %s1111_s9, %s1105_s17 }
 0x313   : > { %p1107_p12 = pnand %p1106_p6, %p924_p10 }
 0x314   : > { %p1114_p8 = por %p1113_p11, %p1112_p4 }
 0x315   : > { %p1108_p3 = pneg %p1107_p12 }
 0x317   : > { %p1115_p7 = pnand %p1114_p8, %p1108_p3 }
 0x319   : > { %1118 = shalt.err (!%p1115_p7)
}
 0x31a   : > { %s1119_s13 = scalar_lea.hbm %s1469_s7, 16 }
 0x31b   : > { %p1120_p9 = scmp.ne.s32.totalorder %s1469_s7, %s1119_s13  ;;  %p1125_p0 = scmp.lt.u32.totalorder %s1119_s13, %s1469_s7 }
 0x31d   : > { %p1121_p5 = pnand %p1120_p9, %p924_p10 }
 0x31f   : > { %p1122_p13 = pneg %p1121_p5 }
 0x321   : > { %p1127_p1 = pnand %p1125_p0, %p1122_p13 }
 0x323   : > { %1130 = shalt.err (!%p1127_p1)
}
 0x324   : > { %892 = dma.vmem_to_hbm [thread:$0]  (%p924_p10), %s1401_s20, 16, %s1469_s7, [#allocation16]  }
 0x325   : > { %1156 = dma.done.wait (%p924_p10), [#allocation16], 16  }
 0x326   : > { %1158 = vsyncadd (%p924_p10), [#allocation16], 4294967280 }
 0x327 PF: > { %p928_p2 = scmp.eq.s32.totalorder %s834_s28, 1  ;;  %p1496_p6 = scmp.ge.s32.totalorder %s1173_s26, 2 }
 0x329   : > { %p912_p12 = pnand %p928_p2, %p1496_p6 }
 0x32b   : > { %1160 = dma.done.wait (!%p912_p12), [#allocation9], 128  }
 0x32c   : > { %1162 = vsyncadd (!%p912_p12), [#allocation9], 4294967168  ;;  %s24_s26 = sadd.s32 1, %s1173_s26   ;;  %s1497_s24 = smov %s1169_s25 }
 0x32d   : > { %p21_p3 = scmp.ge.s32.totalorder %s24_s26, 4   ;;  %s1498_s25 = smov %s1500_s29 }
 0x32f   :  { %23 = sbr.rel (!%p21_p3) target bundleno = 6 (0x6), region = 139 }
 0x336   :  { %699 = vsyncpa [#allocation8], 1 }
 0x337   :  { %701 = vsyncpa [#allocation8 + $0x1], 1 }
 0x338   :  { %702 = vsyncpa [#allocation11], 1 }
 0x339   :  { %703 = vsyncpa [#allocation9], 1 }
 0x33a   :  { %705 = vsyncpa [#allocation9 + $0x1], 1 }
 0x33b   :  { %706 = vsyncpa [#allocation16], 1 }

</bundles_post_ra>
